<compile_context>
chip_gen: v7x
topology: tpu7x:2x2x1
jax: 0.10.0
libtpu: 0.0.40
codegen_flags: <defaults>
</compile_context>

<pallas_src>
import jax
import jax.numpy as jnp
from jax.experimental import pallas as pl
from jax.experimental.pallas import tpu as pltpu


def _round_up(x, m):
    return ((x + m - 1) // m) * m


def _cdiv(a, b):
    return -(-a // b)


def _linear_predictor_kernel(x_ref, w1_ref, b1_ref, alpha_ref, w2_ref, b2_ref, o_ref):
    # Hidden layer: x @ W1 + b1   (MXU matmul, f32 accumulate)
    h = jnp.dot(x_ref[...], w1_ref[...], preferred_element_type=jnp.float32)
    h = h + b1_ref[...]  # b1 is (1, Hp) -> broadcasts over the batch tile

    # PReLU with a single shared parameter (PyTorch nn.PReLU default num_parameters=1)
    alpha = alpha_ref[0, 0]
    h = jnp.where(h >= 0, h, alpha * h)

    # Output layer: h @ W2 + b2
    out = jnp.dot(h.astype(w2_ref.dtype), w2_ref[...], preferred_element_type=jnp.float32)
    o_ref[...] = (out + b2_ref[...]).astype(o_ref.dtype)


def linear_predictor(x, w1, b1, alpha, w2, b2, *, compute_dtype=jnp.bfloat16):
    """x: (B, Din); w1: (Din, H); b1: (H,); alpha: scalar; w2: (H, Dout); b2: (Dout,).

    compute_dtype: dtype of the MXU operands. bf16 (default) hits the native MXU
    rate on v5e/v6e/v7x and halves HBM traffic; accumulation, biases, PReLU and
    the output are always f32. Use jnp.float32 to reproduce PyTorch f32 numerics.
    """
    B, Din = x.shape
    H = w1.shape[1]
    Dout = w2.shape[1]

    # ---- Lane-dense hidden & output dims: pad H and Dout up to multiples of 128.
    Hp = _round_up(H, 128)
    Dout_pad = _round_up(Dout, 128)

    x_c = x.astype(compute_dtype)
    w1_p = w1.astype(compute_dtype)
    w2_p = w2.astype(compute_dtype)
    b1_p = b1.astype(jnp.float32)
    b2_p = b2.astype(jnp.float32)
    if Hp != H:
        w1_p = jnp.pad(w1_p, ((0, 0), (0, Hp - H)))
        b1_p = jnp.pad(b1_p, (0, Hp - H))
        w2_p = jnp.pad(w2_p, ((0, Hp - H), (0, 0)))
    if Dout_pad != Dout:
        w2_p = jnp.pad(w2_p, ((0, 0), (0, Dout_pad - Dout)))
        b2_p = jnp.pad(b2_p, (0, Dout_pad - Dout))

    b1_2d = b1_p.reshape(1, Hp)
    b2_2d = b2_p.reshape(1, Dout_pad)
    alpha_2d = jnp.asarray(alpha, jnp.float32).reshape(1, 1)

    # ---- Generation-aware VMEM budget (v5e/v6e: 128 MiB, v7x: 64 MiB per TC).
    isz = jnp.dtype(compute_dtype).itemsize
    try:
        vmem_cap = int(getattr(pltpu.get_tpu_info(), "vmem_capacity_bytes", 64 << 20))
    except Exception:
        vmem_cap = 64 << 20  # conservative (v7x)
    vmem_budget = (vmem_cap * 3) // 4  # leave headroom for compiler scratch

    def _footprint(tb):
        return (
            2 * tb * Din * isz            # double-buffered x tiles
            + 2 * tb * Dout_pad * 4       # double-buffered out tiles (f32)
            + 2 * Din * Hp * isz          # w1 (model 2 bufs conservatively)
            + 2 * Hp * Dout_pad * isz     # w2
            + 4 * (Hp + Dout_pad) * 4     # biases
            + tb * Hp * 4                 # live f32 intermediate h
        )

    # ---- Batch tiling: 8-sublane aligned, >=2 grid steps when B > 8 so both
    #      TensorCores get work on v7x; shrink TB if the footprint won't fit.
    TB = max(8, min(512, _round_up(_cdiv(B, 2), 8)))
    while TB > 8 and _footprint(TB) + (4 << 20) > vmem_budget:
        TB = max(8, _round_up(TB // 2, 8))
    grid_b = _cdiv(B, TB)
    vmem_limit = int(min(max(_footprint(TB) + (4 << 20), 16 << 20), vmem_budget))

    cost = pl.CostEstimate(
        flops=2 * B * (Din * H + H * Dout),
        transcendentals=0,
        bytes_accessed=(
            B * Din * isz + Din * Hp * isz + Hp * Dout_pad * isz
            + (Hp + Dout_pad + 1) * 4 + B * Dout_pad * 4
        ),
    )

    def _build(single_buffer_weights):
        res_kwargs = {"pipeline_mode": pl.Buffered(1)} if single_buffer_weights else {}
        return pl.pallas_call(
            _linear_predictor_kernel,
            out_shape=jax.ShapeDtypeStruct((B, Dout_pad), jnp.float32),
            grid_spec=pltpu.PrefetchScalarGridSpec(
                num_scalar_prefetch=0,
                grid=(grid_b,),
                in_specs=[
                    pl.BlockSpec((TB, Din), lambda i: (i, 0)),                   # x: tiled over batch
                    pl.BlockSpec((Din, Hp), lambda i: (0, 0), **res_kwargs),     # w1: resident
                    pl.BlockSpec((1, Hp), lambda i: (0, 0), **res_kwargs),       # b1: resident
                    pl.BlockSpec(memory_space=pltpu.SMEM),                       # alpha (scalar)
                    pl.BlockSpec((Hp, Dout_pad), lambda i: (0, 0), **res_kwargs),  # w2: resident
                    pl.BlockSpec((1, Dout_pad), lambda i: (0, 0), **res_kwargs),   # b2: resident
                ],
                out_specs=pl.BlockSpec((TB, Dout_pad), lambda i: (i, 0)),
            ),
            compiler_params=pltpu.CompilerParams(
                dimension_semantics=("parallel",),   # megacore-shard batch on v7x
                vmem_limit_bytes=vmem_limit,
            ),
            cost_estimate=cost,
        )

    args = (x_c, w1_p, b1_2d, alpha_2d, w2_p, b2_2d)
    try:
        out_padded = _build(True)(*args)
    except Exception:
        # Fallback if this JAX build rejects Buffered(1) on the top-level pipeline.
        out_padded = _build(False)(*args)

    # Strip lane padding on the output columns.
    return out_padded[:, :Dout]


if __name__ == "__main__":
    # Small, tile-friendly shapes consistent with the module.
    batch, input_dim, hidden_dim, output_dim = 8, 32, 64, 16

    key = jax.random.PRNGKey(0)
    kx, kw1, kb1, kw2, kb2 = jax.random.split(key, 5)

    # Deterministic synthetic parameters (mimicking PyTorch's uniform init scale).
    x = jax.random.normal(kx, (batch, input_dim), jnp.float32)
    lim1 = 1.0 / (input_dim ** 0.5)
    w1 = jax.random.uniform(kw1, (input_dim, hidden_dim), jnp.float32, -lim1, lim1)
    b1 = jax.random.uniform(kb1, (hidden_dim,), jnp.float32, -lim1, lim1)
    lim2 = 1.0 / (hidden_dim ** 0.5)
    w2 = jax.random.uniform(kw2, (hidden_dim, output_dim), jnp.float32, -lim2, lim2)
    b2 = jax.random.uniform(kb2, (output_dim,), jnp.float32, -lim2, lim2)
    alpha = jnp.float32(0.25)  # nn.PReLU default init

    # Default fast path: bf16 MXU operands, f32 accumulation.
    out_bf16 = jax.block_until_ready(linear_predictor(x, w1, b1, alpha, w2, b2))

    # Strict-numerics path (matches PyTorch f32).
    out_f32 = jax.block_until_ready(
        linear_predictor(x, w1, b1, alpha, w2, b2, compute_dtype=jnp.float32))

    # Pure-JAX references.
    h = x @ w1 + b1
    h = jnp.where(h >= 0, h, alpha * h)
    ref_f32 = h @ w2 + b2

    def _bf16(a):
        return a.astype(jnp.bfloat16).astype(jnp.float32)

    hb = _bf16(x) @ _bf16(w1) + b1
    hb = jnp.where(hb >= 0, hb, alpha * hb)
    ref_bf16 = _bf16(hb) @ _bf16(w2) + b2

    assert out_f32.shape == (batch, output_dim)
    assert out_bf16.shape == (batch, output_dim)
    assert jnp.allclose(out_f32, ref_f32, atol=1e-4, rtol=1e-4)
    assert jnp.allclose(out_bf16, ref_bf16, atol=1e-2, rtol=1e-2)

    print("KERNEL_OK")
</pallas_src>

<mosaic_0001>
module attributes {stable_mosaic.version = 11 : i64} {
  func.func @_linear_predictor_kernel(%arg0: i32, %arg1: memref<8x32xbf16, #tpu.memory_space<vmem>>, %arg2: memref<32x128xbf16, #tpu.memory_space<vmem>>, %arg3: memref<1x128xf32, #tpu.memory_space<vmem>>, %arg4: memref<1x1xf32, #tpu.memory_space<smem>>, %arg5: memref<128x128xbf16, #tpu.memory_space<vmem>>, %arg6: memref<1x128xf32, #tpu.memory_space<vmem>>, %arg7: memref<8x128xf32, #tpu.memory_space<vmem>>) attributes {dimension_semantics = [#tpu.dimension_semantics<parallel>], iteration_bounds = array<i64: 1>, scalar_prefetch = 0 : i64, scratch_operands = 0 : i64, tpu.core_type = #tpu.core_type<tc>, window_params = [{transform_indices = @transform_0, window_bounds = array<i64: 8, 32>}, {pipeline_mode = #tpu.pipeline_mode<synchronous>, transform_indices = @transform_1, window_bounds = array<i64: 32, 128>}, {pipeline_mode = #tpu.pipeline_mode<synchronous>, transform_indices = @transform_2, window_bounds = array<i64: 1, 128>}, {transform_indices = @transform_3, window_bounds = array<i64: 1, 1>}, {pipeline_mode = #tpu.pipeline_mode<synchronous>, transform_indices = @transform_4, window_bounds = array<i64: 128, 128>}, {pipeline_mode = #tpu.pipeline_mode<synchronous>, transform_indices = @transform_5, window_bounds = array<i64: 1, 128>}, {transform_indices = @transform_6, window_bounds = array<i64: 8, 128>}]} {
    %c0 = arith.constant 0 : index
    %c0_0 = arith.constant 0 : index
    %0 = vector.load %arg1[%c0, %c0_0] : memref<8x32xbf16, #tpu.memory_space<vmem>>, vector<8x32xbf16>
    %c0_1 = arith.constant 0 : index
    %c0_2 = arith.constant 0 : index
    %1 = vector.load %arg2[%c0_1, %c0_2] : memref<32x128xbf16, #tpu.memory_space<vmem>>, vector<32x128xbf16>
    %cst = arith.constant dense<0.000000e+00> : vector<8x128xf32>
    %2 = tpu.matmul %0, %1, %cst {dimension_numbers = #tpu.dot_dimension_numbers<[1], [0], [0], [1], [0, 0, 1, 1], [], []>} : vector<8x32xbf16>, vector<32x128xbf16>, vector<8x128xf32> -> vector<8x128xf32>
    %c0_3 = arith.constant 0 : index
    %c0_4 = arith.constant 0 : index
    %3 = vector.load %arg3[%c0_3, %c0_4] : memref<1x128xf32, #tpu.memory_space<vmem>>, vector<1x128xf32>
    %4 = vector.broadcast %3 : vector<1x128xf32> to vector<8x128xf32>
    %5 = arith.addf %2, %4 : vector<8x128xf32>
    %c0_5 = arith.constant 0 : index
    %c0_6 = arith.constant 0 : index
    %6 = memref.load %arg4[%c0_5, %c0_6] : memref<1x1xf32, #tpu.memory_space<smem>>
    %cst_7 = arith.constant 0.000000e+00 : f32
    %7 = vector.broadcast %cst_7 : f32 to vector<8x128xf32>
    %8 = arith.cmpf oge, %5, %7 : vector<8x128xf32>
    %9 = vector.broadcast %6 : f32 to vector<8x128xf32>
    %10 = arith.mulf %9, %5 : vector<8x128xf32>
    %11 = arith.select %8, %5, %10 : vector<8x128xi1>, vector<8x128xf32>
    %12 = arith.truncf %11 : vector<8x128xf32> to vector<8x128xbf16>
    %c0_8 = arith.constant 0 : index
    %c0_9 = arith.constant 0 : index
    %13 = vector.load %arg5[%c0_8, %c0_9] : memref<128x128xbf16, #tpu.memory_space<vmem>>, vector<128x128xbf16>
    %cst_10 = arith.constant dense<0.000000e+00> : vector<8x128xf32>
    %14 = tpu.matmul %12, %13, %cst_10 {dimension_numbers = #tpu.dot_dimension_numbers<[1], [0], [0], [1], [0, 0, 1, 1], [], []>} : vector<8x128xbf16>, vector<128x128xbf16>, vector<8x128xf32> -> vector<8x128xf32>
    %c0_11 = arith.constant 0 : index
    %c0_12 = arith.constant 0 : index
    %15 = vector.load %arg6[%c0_11, %c0_12] : memref<1x128xf32, #tpu.memory_space<vmem>>, vector<1x128xf32>
    %16 = vector.broadcast %15 : vector<1x128xf32> to vector<8x128xf32>
    %17 = arith.addf %14, %16 : vector<8x128xf32>
    %c0_13 = arith.constant 0 : index
    %c0_14 = arith.constant 0 : index
    %18 = vector.load %arg7[%c0_13, %c0_14] : memref<8x128xf32, #tpu.memory_space<vmem>>, vector<8x128xf32>
    tpu.vector_store %arg7[%c0_13, %c0_14], %17 {strides = array<i32>} : memref<8x128xf32, #tpu.memory_space<vmem>>, vector<8x128xf32>,
    return
  }
  func.func @transform_0(%arg0: i32) -> (i32, i32) {
    %c0_i32 = arith.constant 0 : i32
    %c0_i32_0 = arith.constant 0 : i32
    return %arg0, %c0_i32 : i32, i32
  }
  func.func @transform_1(%arg0: i32) -> (i32, i32) {
    %c0_i32 = arith.constant 0 : i32
    %c0_i32_0 = arith.constant 0 : i32
    %c0_i32_1 = arith.constant 0 : i32
    return %c0_i32, %c0_i32_0 : i32, i32
  }
  func.func @transform_2(%arg0: i32) -> (i32, i32) {
    %c0_i32 = arith.constant 0 : i32
    %c0_i32_0 = arith.constant 0 : i32
    %c0_i32_1 = arith.constant 0 : i32
    return %c0_i32, %c0_i32_0 : i32, i32
  }
  func.func @transform_3(%arg0: i32) -> (i32, i32) {
    %c0_i32 = arith.constant 0 : i32
    %c0_i32_0 = arith.constant 0 : i32
    %c0_i32_1 = arith.constant 0 : i32
    return %c0_i32, %c0_i32_0 : i32, i32
  }
  func.func @transform_4(%arg0: i32) -> (i32, i32) {
    %c0_i32 = arith.constant 0 : i32
    %c0_i32_0 = arith.constant 0 : i32
    %c0_i32_1 = arith.constant 0 : i32
    return %c0_i32, %c0_i32_0 : i32, i32
  }
  func.func @transform_5(%arg0: i32) -> (i32, i32) {
    %c0_i32 = arith.constant 0 : i32
    %c0_i32_0 = arith.constant 0 : i32
    %c0_i32_1 = arith.constant 0 : i32
    return %c0_i32, %c0_i32_0 : i32, i32
  }
  func.func @transform_6(%arg0: i32) -> (i32, i32) {
    %c0_i32 = arith.constant 0 : i32
    %c0_i32_0 = arith.constant 0 : i32
    return %arg0, %c0_i32 : i32, i32
  }
}

module attributes {stable_mosaic.version = 11 : i64} {
  func.func @_linear_predictor_kernel(%arg0: i32, %arg1: memref<8x32xbf16, #tpu.memory_space<vmem>>, %arg2: memref<32x128xbf16, #tpu.memory_space<vmem>>, %arg3: memref<1x128xf32, #tpu.memory_space<vmem>>, %arg4: memref<1x1xf32, #tpu.memory_space<smem>>, %arg5: memref<128x128xbf16, #tpu.memory_space<vmem>>, %arg6: memref<1x128xf32, #tpu.memory_space<vmem>>, %arg7: memref<8x128xf32, #tpu.memory_space<vmem>>) attributes {dimension_semantics = [#tpu.dimension_semantics<parallel>], iteration_bounds = array<i64: 1>, scalar_prefetch = 0 : i64, scratch_operands = 0 : i64, tpu.core_type = #tpu.core_type<tc>, window_params = [{transform_indices = @transform_0, window_bounds = array<i64: 8, 32>}, {pipeline_mode = #tpu.pipeline_mode<synchronous>, transform_indices = @transform_1, window_bounds = array<i64: 32, 128>}, {pipeline_mode = #tpu.pipeline_mode<synchronous>, transform_indices = @transform_2, window_bounds = array<i64: 1, 128>}, {transform_indices = @transform_3, window_bounds = array<i64: 1, 1>}, {pipeline_mode = #tpu.pipeline_mode<synchronous>, transform_indices = @transform_4, window_bounds = array<i64: 128, 128>}, {pipeline_mode = #tpu.pipeline_mode<synchronous>, transform_indices = @transform_5, window_bounds = array<i64: 1, 128>}, {transform_indices = @transform_6, window_bounds = array<i64: 8, 128>}]} {
    %c0 = arith.constant 0 : index
    %c0_0 = arith.constant 0 : index
    %0 = vector.load %arg1[%c0, %c0_0] : memref<8x32xbf16, #tpu.memory_space<vmem>>, vector<8x32xbf16>
    %c0_1 = arith.constant 0 : index
    %c0_2 = arith.constant 0 : index
    %1 = vector.load %arg2[%c0_1, %c0_2] : memref<32x128xbf16, #tpu.memory_space<vmem>>, vector<32x128xbf16>
    %cst = arith.constant dense<0.000000e+00> : vector<8x128xf32>
    %2 = tpu.matmul %0, %1, %cst {dimension_numbers = #tpu.dot_dimension_numbers<[1], [0], [0], [1], [0, 0, 1, 1], [], []>} : vector<8x32xbf16>, vector<32x128xbf16>, vector<8x128xf32> -> vector<8x128xf32>
    %c0_3 = arith.constant 0 : index
    %c0_4 = arith.constant 0 : index
    %3 = vector.load %arg3[%c0_3, %c0_4] : memref<1x128xf32, #tpu.memory_space<vmem>>, vector<1x128xf32>
    %4 = vector.broadcast %3 : vector<1x128xf32> to vector<8x128xf32>
    %5 = arith.addf %2, %4 : vector<8x128xf32>
    %c0_5 = arith.constant 0 : index
    %c0_6 = arith.constant 0 : index
    %6 = memref.load %arg4[%c0_5, %c0_6] : memref<1x1xf32, #tpu.memory_space<smem>>
    %cst_7 = arith.constant 0.000000e+00 : f32
    %7 = vector.broadcast %cst_7 : f32 to vector<8x128xf32>
    %8 = arith.cmpf oge, %5, %7 : vector<8x128xf32>
    %9 = vector.broadcast %6 : f32 to vector<8x128xf32>
    %10 = arith.mulf %9, %5 : vector<8x128xf32>
    %11 = arith.select %8, %5, %10 : vector<8x128xi1>, vector<8x128xf32>
    %12 = arith.truncf %11 : vector<8x128xf32> to vector<8x128xbf16>
    %c0_8 = arith.constant 0 : index
    %c0_9 = arith.constant 0 : index
    %13 = vector.load %arg5[%c0_8, %c0_9] : memref<128x128xbf16, #tpu.memory_space<vmem>>, vector<128x128xbf16>
    %cst_10 = arith.constant dense<0.000000e+00> : vector<8x128xf32>
    %14 = tpu.matmul %12, %13, %cst_10 {dimension_numbers = #tpu.dot_dimension_numbers<[1], [0], [0], [1], [0, 0, 1, 1], [], []>} : vector<8x128xbf16>, vector<128x128xbf16>, vector<8x128xf32> -> vector<8x128xf32>
    %c0_11 = arith.constant 0 : index
    %c0_12 = arith.constant 0 : index
    %15 = vector.load %arg6[%c0_11, %c0_12] : memref<1x128xf32, #tpu.memory_space<vmem>>, vector<1x128xf32>
    %16 = vector.broadcast %15 : vector<1x128xf32> to vector<8x128xf32>
    %17 = arith.addf %14, %16 : vector<8x128xf32>
    %c0_13 = arith.constant 0 : index
    %c0_14 = arith.constant 0 : index
    %18 = vector.load %arg7[%c0_13, %c0_14] : memref<8x128xf32, #tpu.memory_space<vmem>>, vector<8x128xf32>
    tpu.vector_store %arg7[%c0_13, %c0_14], %17 {strides = array<i32>} : memref<8x128xf32, #tpu.memory_space<vmem>>, vector<8x128xf32>,
    return
  }
  func.func @transform_0(%arg0: i32) -> (i32, i32) {
    %c0_i32 = arith.constant 0 : i32
    %c0_i32_0 = arith.constant 0 : i32
    return %arg0, %c0_i32 : i32, i32
  }
  func.func @transform_1(%arg0: i32) -> (i32, i32) {
    %c0_i32 = arith.constant 0 : i32
    %c0_i32_0 = arith.constant 0 : i32
    %c0_i32_1 = arith.constant 0 : i32
    return %c0_i32, %c0_i32_0 : i32, i32
  }
  func.func @transform_2(%arg0: i32) -> (i32, i32) {
    %c0_i32 = arith.constant 0 : i32
    %c0_i32_0 = arith.constant 0 : i32
    %c0_i32_1 = arith.constant 0 : i32
    return %c0_i32, %c0_i32_0 : i32, i32
  }
  func.func @transform_3(%arg0: i32) -> (i32, i32) {
    %c0_i32 = arith.constant 0 : i32
    %c0_i32_0 = arith.constant 0 : i32
    %c0_i32_1 = arith.constant 0 : i32
    return %c0_i32, %c0_i32_0 : i32, i32
  }
  func.func @transform_4(%arg0: i32) -> (i32, i32) {
    %c0_i32 = arith.constant 0 : i32
    %c0_i32_0 = arith.constant 0 : i32
    %c0_i32_1 = arith.constant 0 : i32
    return %c0_i32, %c0_i32_0 : i32, i32
  }
  func.func @transform_5(%arg0: i32) -> (i32, i32) {
    %c0_i32 = arith.constant 0 : i32
    %c0_i32_0 = arith.constant 0 : i32
    %c0_i32_1 = arith.constant 0 : i32
    return %c0_i32, %c0_i32_0 : i32, i32
  }
  func.func @transform_6(%arg0: i32) -> (i32, i32) {
    %c0_i32 = arith.constant 0 : i32
    %c0_i32_0 = arith.constant 0 : i32
    return %arg0, %c0_i32 : i32, i32
  }
}

</mosaic_0001>

<bundles_post_ra>
// kernel: tpu_custom_call.1
= control target key start
LH: loop header
LB: loop body
LE: loop exit
PB: predicated region body
PF: predicated region fallthrough
CT: control target
= control target key end

     0   :  { %12 = vsyncpa [#allocation4], 0  ;;  %s538_s0 = inlined_call_operand.hbm [shape: bf16[8,32], index: 0, kind: input, shape index: {}]   ;;  %s539_s1 = inlined_call_operand.hbm [shape: bf16[32,128], index: 1, kind: input, shape index: {}]   ;;  %s540_s2 = inlined_call_operand.vmem [shape: f32[1,128], index: 2, kind: input, shape index: {}]   ;;  %s541_s3 = inlined_call_operand.<no memory space> [shape: f32[1,1], index: 3, kind: input, shape index: {}]   ;;  %s542_s4 = inlined_call_operand.hbm [shape: bf16[128,128], index: 4, kind: input, shape index: {}]   ;;  %s543_s5 = inlined_call_operand.vmem [shape: f32[1,128], index: 5, kind: input, shape index: {}]   ;;  %s544_s6 = inlined_call_operand.hbm [shape: f32[8,128], index: 6, kind: output, shape index: {}]  }
   0x1   :  { %13 = vsyncpa [#allocation7], 0 }
   0x2   :  { %14 = vsyncpa [#allocation5], 0  ;;  %s432_s21 = smov [#allocation6]   ;;  %s338_s25 = scalar_lea.hbm %s539_s1, 256 }
   0x3   :  { %s30_s22 = sshll.u32 %s432_s21, 4  ;;  %p339_p0 = scmp.ne.s32.totalorder %s539_s1, %s338_s25  ;;  %s31_s22 = int_to_ptr.vmem [resolvable:$true] %s30_s22 }
   0x4   :  { %p342_p1 = scmp.lt.u32.totalorder %s338_s25, %s539_s1 }
   0x6   :  { %p344_p2 = pnand %p342_p1, %p339_p0 }
   0x8   :  { %347 = shalt.err (!%p344_p2)
}
   0x9   :  { %s348_s30 = scalar_lea.vmem %s31_s22, 256  ;;  %p353_p4 = scmp.lt.s32.totalorder %s31_s22, %s31_s22 }
   0xa   :  { %p349_p3 = scmp.ne.s32.totalorder %s31_s22, %s348_s30  ;;  %p354_p5 = scmp.lt.s32.totalorder %s348_s30, %s348_s30 }
   0xc   :  { %p355_p6 = por %p354_p5, %p353_p4 }
   0xe   :  { %p356_p7 = pnand %p355_p6, %p349_p3 }
  0x10   :  { %359 = shalt.err (!%p356_p7)
}
  0x11   :  { %s433_s7 = smov 64   ;;  %s434_s8 = smov 4  }
  0x12   :  { %36 = dma.hbm_to_vmem [thread:$0]  %s539_s1, 256, %s31_s22, [#allocation7], %s433_s7, %s433_s7, %s434_s8  }
  0x13   :  { %s435_s11 = smov [#allocation3]   ;;  %s436_s13 = smov [#allocation8]  }
  0x14   :  { %s21_s12 = sshll.u32 %s435_s11, 4  ;;  %s46_s14 = sshll.u32 %s436_s13, 4  ;;  %s22_s12 = int_to_ptr.vmem [resolvable:$true] %s21_s12  ;;  %s47_s14 = int_to_ptr.vmem [resolvable:$true] %s46_s14 }
  0x15   :  { %s360_s17 = scalar_lea.hbm %s538_s0, 64 }
  0x16   :  { %p361_p8 = scmp.ne.s32.totalorder %s538_s0, %s360_s17  ;;  %p364_p9 = scmp.lt.u32.totalorder %s360_s17, %s538_s0 }
  0x18   :  { %p366_p10 = pnand %p364_p9, %p361_p8 }
  0x1a   :  { %369 = shalt.err (!%p366_p10)
}
  0x1b   :  { %s370_s1 = scalar_lea.vmem %s22_s12, 64  ;;  %p375_p12 = scmp.lt.s32.totalorder %s22_s12, %s22_s12 }
  0x1c   :  { %p371_p11 = scmp.ne.s32.totalorder %s22_s12, %s370_s1  ;;  %p376_p13 = scmp.lt.s32.totalorder %s370_s1, %s370_s1 }
  0x1e   :  { %p377_p0 = por %p376_p13, %p375_p12 }
  0x20   :  { %p378_p1 = pnand %p377_p0, %p371_p11 }
  0x22   :  { %381 = shalt.err (!%p378_p1)
}
  0x23   :  { %24 = dma.hbm_to_vmem [thread:$0]  %s538_s0, 64, %s22_s12, [#allocation4]  }
  0x24   :  { %s382_s26 = scalar_lea.hbm %s542_s4, 1024 }
  0x25   :  { %p383_p2 = scmp.ne.s32.totalorder %s542_s4, %s382_s26  ;;  %p386_p3 = scmp.lt.u32.totalorder %s382_s26, %s542_s4 }
  0x27   :  { %p388_p4 = pnand %p386_p3, %p383_p2 }
  0x29   :  { %391 = shalt.err (!%p388_p4)
}
  0x2a   :  { %s392_s9 = scalar_lea.vmem %s47_s14, 1024  ;;  %p397_p6 = scmp.lt.s32.totalorder %s47_s14, %s47_s14 }
  0x2b   :  { %p393_p5 = scmp.ne.s32.totalorder %s47_s14, %s392_s9  ;;  %p398_p7 = scmp.lt.s32.totalorder %s392_s9, %s392_s9 }
  0x2d   :  { %p399_p8 = por %p398_p7, %p397_p6 }
  0x2f   :  { %p400_p9 = pnand %p399_p8, %p393_p5 }
  0x31   :  { %403 = shalt.err (!%p400_p9)
}
  0x32   :  { %52 = dma.hbm_to_vmem [thread:$0]  %s542_s4, 1024, %s47_s14, [#allocation7], %s433_s7, %s433_s7, %s434_s8  }
  0x33   :  { %426 = dma.done.wait [#allocation4], 64  }
  0x34   :  { %427 = vsyncadd [#allocation4], 4294967232 }
  0x35   :  { %428 = dma.done.wait [#allocation7], 1280  }
  0x36   :  { %429 = vsyncadd [#allocation7], 4294966016  ;;  %v437_v0 = vmov 0.0   ;;  %vm438_vm0 = vmmov 0   ;;  %v328_v1 = vld [vmem:[#allocation6] sm:$0xff]   ;;  %v329_v2 = vld [vmem:[#allocation6 + $0x8] sm:$0xff]   ;;  %v135_v14 = vstv %s541_s3 }
  0x37   :  { %292 = vmatprep.subr.bf16.mxu0 %v437_v0  ;;  %296 = vmatprep.mubr.msk.bf16.mxu0 %vm438_vm0, %v437_v0  ;;  %v330_v3 = vld [vmem:[#allocation8] sm:$0xff]   ;;  %vm89_vm1 = vcmask 261120   ;;  %v331_v4 = vld [vmem:[#allocation8 + $0x8] sm:$0xff]   ;;  %v332_v6 = vld [vmem:[#allocation8 + $0x10] sm:$0xff]   ;;  %s439_s14 = smov [#allocation9]  }
  0x38   :  { %300 = vmatprep.subr.bf16.mxu1 %v437_v0  ;;  %316 = vmatprep.mubr.msk.bf16.mxu1 %vm438_vm0, %v437_v0  ;;  %v65_v5 = vld [vmem:[#allocation3] sm:$0xf]  ;;  %v333_v7 = vld [vmem:[#allocation8 + $0x18] sm:$0xff]   ;;  %v334_v8 = vld [vmem:[#allocation8 + $0x20] sm:$0xff]  }
  0x39   :  { %293 = vmatpush3.bf16.msra.mxu0 %v328_v1  ;;  %301 = vmatpush3.bf16.msra.mxu1 %v330_v3  ;;  %v335_v9 = vld [vmem:[#allocation8 + $0x28] sm:$0xff]   ;;  %v336_v10 = vld [vmem:[#allocation8 + $0x30] sm:$0xff]   ;;  %v337_v11 = vld [vmem:[#allocation8 + $0x38] sm:$0xff]  }
  0x3a   :  { %294 = vmatprep.subr.bf16.mxu0 %v437_v0  ;;  %302 = vmatprep.subr.bf16.mxu1 %v437_v0  ;;  %v267_v12 = vld [vmem:[%s540_s2] ss:$0 sm:$0xff]  ;;  %s257_s2 = sshll.u32 %s439_s14, 4  ;;  %s258_s2 = int_to_ptr.vmem [resolvable:$true] %s257_s2 }
  0x3b   :  { %v271_v22 = vld [vmem:[%s543_s5] ss:$0 sm:$0xff]  ;;  %s404_s3 = scalar_lea.vmem %s258_s2, 128  ;;  %p409_p11 = scmp.lt.s32.totalorder %s258_s2, %s258_s2 }
  0x3c   :  { %p405_p10 = scmp.ne.s32.totalorder %s258_s2, %s404_s3  ;;  %p410_p12 = scmp.lt.s32.totalorder %s404_s3, %s404_s3 }
  0x3d   :  { %295 = vmatpush3.bf16.msra.mxu0 %v329_v2  ;;  %303 = vmatpush3.bf16.msra.mxu1 %v331_v4 }
  0x3e   :  { %304 = vmatprep.subr.bf16.mxu1 %v437_v0  ;;  %p411_p13 = por %p410_p12, %p409_p11 }
  0x40   :  { %297 = vmatmul.mubr.msk.bf16.vlgmr.msra.gmra.mrb[0].mxu0 %vm89_vm1, %v65_v5  ;;  %p412_p0 = pnand %p411_p13, %p405_p10 }
  0x41   :  { %305 = vmatpush3.bf16.msra.mxu1 %v332_v6 }
  0x42   :  { %306 = vmatprep.subr.bf16.mxu1 %v437_v0 }
  0x45   :  { %307 = vmatpush3.bf16.msra.mxu1 %v333_v7 }
  0x46   :  { %308 = vmatprep.subr.bf16.mxu1 %v437_v0 }
  0x49   :  { %309 = vmatpush3.bf16.msra.mxu1 %v334_v8 }
  0x4a   :  { %310 = vmatprep.subr.bf16.mxu1 %v437_v0 }
  0x4d   :  { %311 = vmatpush3.bf16.msra.mxu1 %v335_v9 }
  0x4e   :  { %312 = vmatprep.subr.bf16.mxu1 %v437_v0 }
  0x51   :  { %313 = vmatpush3.bf16.msra.mxu1 %v336_v10 }
  0x52   :  { %314 = vmatprep.subr.bf16.mxu1 %v437_v0 }
  0x55   :  { %315 = vmatpush3.bf16.msra.mxu1 %v337_v11 }
 0x113   :  { %v127_v13 = vpop.f32.mrb[0].mxu0 }
 0x114   :  { %v128_v15 = vadd.f32 %v267_v12, %v127_v13  ;;  %v298_v16 = vpop.f32.mrb[1].mxu0 }
 0x115   :  { %v130_v17 = vpop.f32.mrb[2].mxu0 }
 0x116   :  { %vm134_vm2 = vcmp.ge.f32.partialorder %v128_v15, 0.0  ;;  %v136_v18 = vmul.f32 %v135_v14, %v128_v15  ;;  %v299_v19 = vpop.f32.mrb[3].mxu0 }
 0x118   :  { %v137_v20 = vsel %vm134_vm2, %v128_v15, %v136_v18 }
 0x119   :  { %v138_v21 = vpack.c.bf16 %v137_v20, %v137_v20 }
 0x11b   :  { %317 = vmatmul.mubr.bf16.vlgmr.msra.gmra.mrb[0].mxu1 %v138_v21 }
 0x1ee   :  { %v244_v23 = vpop.f32.mrb[0].mxu1 }
 0x1ef   :  { %v245_v24 = vadd.f32 %v271_v22, %v244_v23  ;;  %v318_v25 = vpop.f32.mrb[1].mxu1 }
 0x1f0   :  { %v247_v26 = vpop.f32.mrb[2].mxu1 }
 0x1f1   :  { %250 = vst [vmem:[#allocation9] sm:$0xff] %v245_v24  ;;  %v319_v27 = vpop.f32.mrb[3].mxu1 }
 0x1f2   :  { %415 = shalt.err (!%p412_p0)
}
 0x1f3   :  { %s416_s5 = scalar_lea.hbm %s544_s6, 128 }
 0x1f4   :  { %p417_p1 = scmp.ne.s32.totalorder %s544_s6, %s416_s5  ;;  %p420_p2 = scmp.lt.u32.totalorder %s416_s5, %s544_s6 }
 0x1f6   :  { %p422_p3 = pnand %p420_p2, %p417_p1 }
 0x1f8   :  { %425 = shalt.err (!%p422_p3)
}
 0x1f9   :  { %260 = dma.vmem_to_hbm [thread:$0]  %s258_s2, 128, %s544_s6, [#allocation5]  }
 0x1fa   :  { %430 = dma.done.wait [#allocation5], 128  }
 0x1fb   :  { %431 = vsyncadd [#allocation5], 4294967168 }
 0x1fc   :  { %264 = vsyncpa [#allocation4], 1 }
 0x1fd   :  { %265 = vsyncpa [#allocation7], 1 }
 0x1fe   :  { %266 = vsyncpa [#allocation5], 1 }

// kernel: tpu_custom_call.1
= control target key start
LH: loop header
LB: loop body
LE: loop exit
PB: predicated region body
PF: predicated region fallthrough
CT: control target
= control target key end

     0   :  { %12 = vsyncpa [#allocation4], 0  ;;  %s538_s0 = inlined_call_operand.hbm [shape: bf16[8,32], index: 0, kind: input, shape index: {}]   ;;  %s539_s1 = inlined_call_operand.hbm [shape: bf16[32,128], index: 1, kind: input, shape index: {}]   ;;  %s540_s2 = inlined_call_operand.vmem [shape: f32[1,128], index: 2, kind: input, shape index: {}]   ;;  %s541_s3 = inlined_call_operand.<no memory space> [shape: f32[1,1], index: 3, kind: input, shape index: {}]   ;;  %s542_s4 = inlined_call_operand.hbm [shape: bf16[128,128], index: 4, kind: input, shape index: {}]   ;;  %s543_s5 = inlined_call_operand.vmem [shape: f32[1,128], index: 5, kind: input, shape index: {}]   ;;  %s544_s6 = inlined_call_operand.hbm [shape: f32[8,128], index: 6, kind: output, shape index: {}]  }
   0x1   :  { %13 = vsyncpa [#allocation7], 0 }
   0x2   :  { %14 = vsyncpa [#allocation5], 0  ;;  %s432_s21 = smov [#allocation6]   ;;  %s338_s25 = scalar_lea.hbm %s539_s1, 256 }
   0x3   :  { %s30_s22 = sshll.u32 %s432_s21, 4  ;;  %p339_p0 = scmp.ne.s32.totalorder %s539_s1, %s338_s25  ;;  %s31_s22 = int_to_ptr.vmem [resolvable:$true] %s30_s22 }
   0x4   :  { %p342_p1 = scmp.lt.u32.totalorder %s338_s25, %s539_s1 }
   0x6   :  { %p344_p2 = pnand %p342_p1, %p339_p0 }
   0x8   :  { %347 = shalt.err (!%p344_p2)
}
   0x9   :  { %s348_s30 = scalar_lea.vmem %s31_s22, 256  ;;  %p353_p4 = scmp.lt.s32.totalorder %s31_s22, %s31_s22 }
   0xa   :  { %p349_p3 = scmp.ne.s32.totalorder %s31_s22, %s348_s30  ;;  %p354_p5 = scmp.lt.s32.totalorder %s348_s30, %s348_s30 }
   0xc   :  { %p355_p6 = por %p354_p5, %p353_p4 }
   0xe   :  { %p356_p7 = pnand %p355_p6, %p349_p3 }
  0x10   :  { %359 = shalt.err (!%p356_p7)
}
  0x11   :  { %s433_s7 = smov 64   ;;  %s434_s8 = smov 4  }
  0x12   :  { %36 = dma.hbm_to_vmem [thread:$0]  %s539_s1, 256, %s31_s22, [#allocation7], %s433_s7, %s433_s7, %s434_s8  }
  0x13   :  { %s435_s11 = smov [#allocation3]   ;;  %s436_s13 = smov [#allocation8]  }
  0x14   :  { %s21_s12 = sshll.u32 %s435_s11, 4  ;;  %s46_s14 = sshll.u32 %s436_s13, 4  ;;  %s22_s12 = int_to_ptr.vmem [resolvable:$true] %s21_s12  ;;  %s47_s14 = int_to_ptr.vmem [resolvable:$true] %s46_s14 }
  0x15   :  { %s360_s17 = scalar_lea.hbm %s538_s0, 64 }
  0x16   :  { %p361_p8 = scmp.ne.s32.totalorder %s538_s0, %s360_s17  ;;  %p364_p9 = scmp.lt.u32.totalorder %s360_s17, %s538_s0 }
  0x18   :  { %p366_p10 = pnand %p364_p9, %p361_p8 }
  0x1a   :  { %369 = shalt.err (!%p366_p10)
}
  0x1b   :  { %s370_s1 = scalar_lea.vmem %s22_s12, 64  ;;  %p375_p12 = scmp.lt.s32.totalorder %s22_s12, %s22_s12 }
  0x1c   :  { %p371_p11 = scmp.ne.s32.totalorder %s22_s12, %s370_s1  ;;  %p376_p13 = scmp.lt.s32.totalorder %s370_s1, %s370_s1 }
  0x1e   :  { %p377_p0 = por %p376_p13, %p375_p12 }
  0x20   :  { %p378_p1 = pnand %p377_p0, %p371_p11 }
  0x22   :  { %381 = shalt.err (!%p378_p1)
}
  0x23   :  { %24 = dma.hbm_to_vmem [thread:$0]  %s538_s0, 64, %s22_s12, [#allocation4]  }
  0x24   :  { %s382_s26 = scalar_lea.hbm %s542_s4, 1024 }
  0x25   :  { %p383_p2 = scmp.ne.s32.totalorder %s542_s4, %s382_s26  ;;  %p386_p3 = scmp.lt.u32.totalorder %s382_s26, %s542_s4 }
  0x27   :  { %p388_p4 = pnand %p386_p3, %p383_p2 }
  0x29   :  { %391 = shalt.err (!%p388_p4)
}
  0x2a   :  { %s392_s9 = scalar_lea.vmem %s47_s14, 1024  ;;  %p397_p6 = scmp.lt.s32.totalorder %s47_s14, %s47_s14 }
  0x2b   :  { %p393_p5 = scmp.ne.s32.totalorder %s47_s14, %s392_s9  ;;  %p398_p7 = scmp.lt.s32.totalorder %s392_s9, %s392_s9 }
  0x2d   :  { %p399_p8 = por %p398_p7, %p397_p6 }
  0x2f   :  { %p400_p9 = pnand %p399_p8, %p393_p5 }
  0x31   :  { %403 = shalt.err (!%p400_p9)
}
  0x32   :  { %52 = dma.hbm_to_vmem [thread:$0]  %s542_s4, 1024, %s47_s14, [#allocation7], %s433_s7, %s433_s7, %s434_s8  }
  0x33   :  { %426 = dma.done.wait [#allocation4], 64  }
  0x34   :  { %427 = vsyncadd [#allocation4], 4294967232 }
  0x35   :  { %428 = dma.done.wait [#allocation7], 1280  }
  0x36   :  { %429 = vsyncadd [#allocation7], 4294966016  ;;  %v437_v0 = vmov 0.0   ;;  %vm438_vm0 = vmmov 0   ;;  %v328_v1 = vld [vmem:[#allocation6] sm:$0xff]   ;;  %v329_v2 = vld [vmem:[#allocation6 + $0x8] sm:$0xff]   ;;  %v135_v14 = vstv %s541_s3 }
  0x37   :  { %292 = vmatprep.subr.bf16.mxu0 %v437_v0  ;;  %296 = vmatprep.mubr.msk.bf16.mxu0 %vm438_vm0, %v437_v0  ;;  %v330_v3 = vld [vmem:[#allocation8] sm:$0xff]   ;;  %vm89_vm1 = vcmask 261120   ;;  %v331_v4 = vld [vmem:[#allocation8 + $0x8] sm:$0xff]   ;;  %v332_v6 = vld [vmem:[#allocation8 + $0x10] sm:$0xff]   ;;  %s439_s14 = smov [#allocation9]  }
  0x38   :  { %300 = vmatprep.subr.bf16.mxu1 %v437_v0  ;;  %316 = vmatprep.mubr.msk.bf16.mxu1 %vm438_vm0, %v437_v0  ;;  %v65_v5 = vld [vmem:[#allocation3] sm:$0xf]  ;;  %v333_v7 = vld [vmem:[#allocation8 + $0x18] sm:$0xff]   ;;  %v334_v8 = vld [vmem:[#allocation8 + $0x20] sm:$0xff]  }
  0x39   :  { %293 = vmatpush3.bf16.msra.mxu0 %v328_v1  ;;  %301 = vmatpush3.bf16.msra.mxu1 %v330_v3  ;;  %v335_v9 = vld [vmem:[#allocation8 + $0x28] sm:$0xff]   ;;  %v336_v10 = vld [vmem:[#allocation8 + $0x30] sm:$0xff]   ;;  %v337_v11 = vld [vmem:[#allocation8 + $0x38] sm:$0xff]  }
  0x3a   :  { %294 = vmatprep.subr.bf16.mxu0 %v437_v0  ;;  %302 = vmatprep.subr.bf16.mxu1 %v437_v0  ;;  %v267_v12 = vld [vmem:[%s540_s2] ss:$0 sm:$0xff]  ;;  %s257_s2 = sshll.u32 %s439_s14, 4  ;;  %s258_s2 = int_to_ptr.vmem [resolvable:$true] %s257_s2 }
  0x3b   :  { %v271_v22 = vld [vmem:[%s543_s5] ss:$0 sm:$0xff]  ;;  %s404_s3 = scalar_lea.vmem %s258_s2, 128  ;;  %p409_p11 = scmp.lt.s32.totalorder %s258_s2, %s258_s2 }
  0x3c   :  { %p405_p10 = scmp.ne.s32.totalorder %s258_s2, %s404_s3  ;;  %p410_p12 = scmp.lt.s32.totalorder %s404_s3, %s404_s3 }
  0x3d   :  { %295 = vmatpush3.bf16.msra.mxu0 %v329_v2  ;;  %303 = vmatpush3.bf16.msra.mxu1 %v331_v4 }
  0x3e   :  { %304 = vmatprep.subr.bf16.mxu1 %v437_v0  ;;  %p411_p13 = por %p410_p12, %p409_p11 }
  0x40   :  { %297 = vmatmul.mubr.msk.bf16.vlgmr.msra.gmra.mrb[0].mxu0 %vm89_vm1, %v65_v5  ;;  %p412_p0 = pnand %p411_p13, %p405_p10 }
  0x41   :  { %305 = vmatpush3.bf16.msra.mxu1 %v332_v6 }
  0x42   :  { %306 = vmatprep.subr.bf16.mxu1 %v437_v0 }
  0x45   :  { %307 = vmatpush3.bf16.msra.mxu1 %v333_v7 }
  0x46   :  { %308 = vmatprep.subr.bf16.mxu1 %v437_v0 }
  0x49   :  { %309 = vmatpush3.bf16.msra.mxu1 %v334_v8 }
  0x4a   :  { %310 = vmatprep.subr.bf16.mxu1 %v437_v0 }
  0x4d   :  { %311 = vmatpush3.bf16.msra.mxu1 %v335_v9 }
  0x4e   :  { %312 = vmatprep.subr.bf16.mxu1 %v437_v0 }
  0x51   :  { %313 = vmatpush3.bf16.msra.mxu1 %v336_v10 }
  0x52   :  { %314 = vmatprep.subr.bf16.mxu1 %v437_v0 }
  0x55   :  { %315 = vmatpush3.bf16.msra.mxu1 %v337_v11 }
 0x113   :  { %v127_v13 = vpop.f32.mrb[0].mxu0 }
 0x114   :  { %v128_v15 = vadd.f32 %v267_v12, %v127_v13  ;;  %v298_v16 = vpop.f32.mrb[1].mxu0 }
 0x115   :  { %v130_v17 = vpop.f32.mrb[2].mxu0 }
 0x116   :  { %vm134_vm2 = vcmp.ge.f32.partialorder %v128_v15, 0.0  ;;  %v136_v18 = vmul.f32 %v135_v14, %v128_v15  ;;  %v299_v19 = vpop.f32.mrb[3].mxu0 }
 0x118   :  { %v137_v20 = vsel %vm134_vm2, %v128_v15, %v136_v18 }
 0x119   :  { %v138_v21 = vpack.c.bf16 %v137_v20, %v137_v20 }
 0x11b   :  { %317 = vmatmul.mubr.bf16.vlgmr.msra.gmra.mrb[0].mxu1 %v138_v21 }
 0x1ee   :  { %v244_v23 = vpop.f32.mrb[0].mxu1 }
 0x1ef   :  { %v245_v24 = vadd.f32 %v271_v22, %v244_v23  ;;  %v318_v25 = vpop.f32.mrb[1].mxu1 }
 0x1f0   :  { %v247_v26 = vpop.f32.mrb[2].mxu1 }
 0x1f1   :  { %250 = vst [vmem:[#allocation9] sm:$0xff] %v245_v24  ;;  %v319_v27 = vpop.f32.mrb[3].mxu1 }
 0x1f2   :  { %415 = shalt.err (!%p412_p0)
}
 0x1f3   :  { %s416_s5 = scalar_lea.hbm %s544_s6, 128 }
 0x1f4   :  { %p417_p1 = scmp.ne.s32.totalorder %s544_s6, %s416_s5  ;;  %p420_p2 = scmp.lt.u32.totalorder %s416_s5, %s544_s6 }
 0x1f6   :  { %p422_p3 = pnand %p420_p2, %p417_p1 }
 0x1f8   :  { %425 = shalt.err (!%p422_p3)
}
 0x1f9   :  { %260 = dma.vmem_to_hbm [thread:$0]  %s258_s2, 128, %s544_s6, [#allocation5]  }
 0x1fa   :  { %430 = dma.done.wait [#allocation5], 128  }
 0x1fb   :  { %431 = vsyncadd [#allocation5], 4294967168 }
 0x1fc   :  { %264 = vsyncpa [#allocation4], 1 }
 0x1fd   :  { %265 = vsyncpa [#allocation7], 1 }
 0x1fe   :  { %266 = vsyncpa [#allocation5], 1 }

</bundles_post_ra>
